<compile_context>
chip_gen: v7x
topology: tpu7x:2x2x1
jax: 0.10.0
libtpu: 0.0.40
codegen_flags: <defaults>
</compile_context>

<pallas_src>
import functools

import jax
import jax.numpy as jnp
import numpy as np
from jax import lax
from jax.experimental import pallas as pl
from jax.experimental.pallas import tpu as pltpu

_TRANS_B_DIMS = (((1,), (1,)), ((), ()))          # A (m,k) · B (n,k) -> (m,n)


# ---------------------------------------------------------------------------
# pltpu.roll convention probe (tiny cached pallas_call): guards against the
# rotate-direction convention differing across jax versions.
# ---------------------------------------------------------------------------
@functools.lru_cache(maxsize=1)
def _pltpu_roll_sign():
    """+1 if pltpu.roll follows jnp.roll semantics (out[i] = x[i - shift])."""
    def probe(x_ref, o_ref):
        o_ref[...] = pltpu.roll(x_ref[...], 1, axis=1)

    x = jnp.broadcast_to(jnp.arange(128, dtype=jnp.float32)[None, :], (8, 128))
    y = pl.pallas_call(
        probe, out_shape=jax.ShapeDtypeStruct((8, 128), jnp.float32))(x)
    return 1 if float(y[0, 1]) == 0.0 else -1


# ---------------------------------------------------------------------------
# Fused kernel: one batch block (Nb elements x all M instances) per grid step.
# ---------------------------------------------------------------------------
def _trm_kernel(x_ref, dbn_s_ref, dbn_t_ref, ablk_ref, mask_ref, pool_ref,
                wg1_ref, b11_ref, wt1_ref, b21_ref,
                wg2_ref, b12_ref, wt2_ref, b22_ref,
                wg3_ref, b13_ref, wt3_ref, b23_ref,
                wfcn_t_ref, bfcn_ref, o_ref, tap_ref,
                *, V, Kt, roll_sign, inv_pool):
    L = x_ref.shape[-1]                       # Nb * M * T * V lanes
    pad = (Kt - 1) // 2

    # bf16 mask rows (tiny), loaded/cast once and reused by all three layers
    mask_rows = [mask_ref[d:d + 1, :].astype(jnp.bfloat16) for d in range(Kt)]

    def st_gcn_layer(xb, wg_ref, b1_ref, wtp_ref, b2_ref):
        """One st_gcn block (residual=False, stride=1, K=1); BNs folded."""
        Cout = wg_ref.shape[0]
        # gcn: 1x1 conv (BN1 scale folded into rows of wg) ...
        z = jnp.dot(wg_ref[...], xb, preferred_element_type=jnp.float32)
        # ... then graph mix over V on the lane axis (block-diagonal A)
        g = jnp.dot(z.astype(jnp.bfloat16), ablk_ref[...],
                    preferred_element_type=jnp.float32)
        # folded BN1 shift + gcn-bias-through-A + ReLU; cast to bf16 ONCE
        h = jnp.maximum(g + b1_ref[...], 0.0).astype(jnp.bfloat16)
        # tcn: stack the Kt shifted+masked taps along the contracting axis in a
        # VMEM scratch (bf16 rolls / mask-muls), then ONE big matmul.
        for d in range(Kt):
            shift = (roll_sign * (pad - d) * V) % L
            hs = h if shift == 0 else pltpu.roll(h, shift, axis=1)
            tap_ref[d * Cout:(d + 1) * Cout, :] = hs * mask_rows[d]
        acc = jnp.dot(wtp_ref[...], tap_ref[:Kt * Cout, :],
                      preferred_element_type=jnp.float32)
        # dropout = eval identity, residual = False, final ReLU; cast once
        return jnp.maximum(acc + b2_ref[...], 0.0).astype(jnp.bfloat16)

    # folded data_bn (per (c, v), tiled over the whole lane axis); f32 in, bf16 out
    x0 = (x_ref[0] * dbn_s_ref[...] + dbn_t_ref[...]).astype(jnp.bfloat16)
    h = st_gcn_layer(x0, wg1_ref, b11_ref, wt1_ref, b21_ref)
    h = st_gcn_layer(h, wg2_ref, b12_ref, wt2_ref, b22_ref)
    h = st_gcn_layer(h, wg3_ref, b13_ref, wt3_ref, b23_ref)

    # avg_pool over (T, V) + mean over M, per folded batch element, as one MXU
    # contraction against a 0/1 pooling matrix (A · Bᵀ form — no transposes).
    pooled = lax.dot_general(pool_ref[...], h, _TRANS_B_DIMS,
                             preferred_element_type=jnp.float32) * inv_pool
    # fcn 1x1 conv after pooling -> (Nb, num_class): classes on the lane axis
    y = jnp.dot(pooled.astype(jnp.bfloat16), wfcn_t_ref[...],
                preferred_element_type=jnp.float32) + bfcn_ref[...]
    o_ref[0] = y.astype(o_ref.dtype)


# ---------------------------------------------------------------------------
# Parameter construction (toy weights, eval-mode BN stats)
# ---------------------------------------------------------------------------
def make_model_params(key, in_channels, V, num_class, Kt, channels=(64, 32, 16)):
    keys = iter(jax.random.split(key, 128))

    def nrm(shape, scale=1.0):
        return scale * jax.random.normal(next(keys), shape, jnp.float32)

    def bn_params(C):
        return dict(gamma=1.0 + 0.1 * nrm((C,)),
                    beta=0.1 * nrm((C,)),
                    mean=0.1 * nrm((C,)),
                    var=jax.random.uniform(next(keys), (C,), jnp.float32, 0.8, 1.2))

    layers = []
    c_prev = in_channels
    for c in channels:
        layers.append(dict(
            w_gcn=nrm((c, c_prev), 1.0 / np.sqrt(c_prev)),   # K == 1 -> (K*Cout, Cin)
            b_gcn=0.1 * nrm((c,)),
            bn1=bn_params(c),
            w_tcn=nrm((c, c, Kt), 1.0 / np.sqrt(c * Kt)),
            b_tcn=0.1 * nrm((c,)),
            bn2=bn_params(c),
        ))
        c_prev = c

    return dict(
        data_bn=bn_params(in_channels * V),
        layers=layers,
        fcn_w=nrm((num_class, channels[-1]), 1.0 / np.sqrt(channels[-1])),
        fcn_b=0.1 * nrm((num_class,)),
    )


def _fold_bn(bn, eps=1e-5):
    s = bn['gamma'] / jnp.sqrt(bn['var'] + eps)
    return s, bn['beta'] - bn['mean'] * s


def pack_model(params, A_dad, edge_importance, in_channels, T, V, M, Nb):
    """Host-side packing: fold BNs, build graph-mix / mask / pooling constants."""
    f32, bf16 = jnp.float32, jnp.bfloat16
    Kt = params['layers'][0]['w_tcn'].shape[2]
    pad = (Kt - 1) // 2
    reps = Nb * M                               # (T, V) instances folded into lanes
    L = reps * T * V
    MTV = M * T * V

    # effective adjacency used by the model forward (K == 1)
    e2 = edge_importance * edge_importance
    A_eff = (A_dad * (e2 + jnp.swapaxes(e2, 1, 2)))[0]            # (V, V)
    # TODO(synk): kron(I, A_eff) is (L, L); at realistic T (>100 frames) re-block
    # the graph mix per time tile and raise vmem_limit_bytes instead.
    ablk = jnp.kron(jnp.eye(reps * T, dtype=f32), A_eff)          # (L, L) block-diag
    col_sum = jnp.sum(A_eff, axis=0)                              # (V,)

    # folded data_bn (BatchNorm1d over V*C channels, channel index = v*C + c)
    s_bn, t_bn = _fold_bn(params['data_bn'])
    dbn_s = jnp.tile(s_bn.reshape(V, in_channels).T, (1, reps * T))   # (Cin, L)
    dbn_t = jnp.tile(t_bn.reshape(V, in_channels).T, (1, reps * T))

    # temporal-conv boundary masks; these also zero taps that would wrap across
    # a person/batch boundary when the lane roll wraps the whole L axis.
    t_idx = jnp.arange(T)[None, :]
    d_idx = jnp.arange(Kt)[:, None]
    valid = ((t_idx + d_idx - pad >= 0) & (t_idx + d_idx - pad < T)).astype(f32)
    masks = jnp.tile(jnp.repeat(valid, V, axis=1), (1, reps))         # (Kt, L)

    # 0/1 pooling matrix: row nb selects the M*T*V lanes of folded element nb
    pool = jnp.kron(jnp.eye(Nb, dtype=f32), jnp.ones((1, MTV), f32))  # (Nb, L)

    layers = []
    for lp in params['layers']:
        s1, t1 = _fold_bn(lp['bn1'])
        s2, t2 = _fold_bn(lp['bn2'])
        cout = lp['w_tcn'].shape[0]
        wg = (s1[:, None] * lp['w_gcn']).astype(bf16)                 # (Cout, Cin)
        b1 = jnp.tile((s1 * lp['b_gcn'])[:, None] * col_sum[None, :]
                      + t1[:, None], (1, reps * T)).astype(f32)       # (Cout, L)
        # stacked temporal taps: column d*Cout + c  <->  tap d, input channel c
        wt = (jnp.transpose(lp['w_tcn'], (0, 2, 1)).reshape(cout, Kt * cout)
              * s2[:, None]).astype(bf16)                             # (Cout, Kt*Cout)
        b2 = ((s2 * lp['b_tcn'] + t2)[:, None]).astype(f32)           # (Cout, 1)
        layers.append(dict(wg=wg, b1=b1, wt=wt, b2=b2))

    return dict(
        dbn_s=dbn_s.astype(f32), dbn_t=dbn_t.astype(f32),
        ablk=ablk.astype(bf16), masks=masks.astype(f32),
        pool=pool.astype(bf16),
        layers=layers,
        wfcn_t=params['fcn_w'].T.astype(bf16),                        # (C_last, num_class)
        bfcn=params['fcn_b'][None, :].astype(f32),                    # (1, num_class)
    )


def _pick_batch_block(N, M, T, V, target_lanes=256):
    """Smallest batch block whose lane slab reaches target_lanes (keeps the grid
    long — and, at the toy sizes here, even — for v7x megacore sharding)."""
    lanes_per_n = M * T * V
    for nb in range(1, N + 1):
        if N % nb == 0 and nb * lanes_per_n >= target_lanes:
            return nb
    return N


# ---------------------------------------------------------------------------
# Wrapper: pallas_call with a parallel grid over batch blocks
# ---------------------------------------------------------------------------
def temporal_regression_forward(x, A_dad, edge_importance, params, batch_block=None):
    """x: (N, C, T, V, M) -> (N, num_class); eval-mode forward."""
    N, Cin, T, V, M = x.shape
    Kt = params['layers'][0]['w_tcn'].shape[2]
    num_class = params['fcn_w'].shape[0]
    Cmax = max(lp['w_tcn'].shape[0] for lp in params['layers'])

    Nb = batch_block if batch_block is not None else _pick_batch_block(N, M, T, V)
    assert N % Nb == 0
    G = N // Nb
    L = Nb * M * T * V

    q = pack_model(params, A_dad, edge_importance, Cin, T, V, M, Nb)

    # per grid step: channels on sublanes, flattened (nb, m, t, v) on lanes;
    # input stays f32 so data_bn runs at full precision.
    x2 = (jnp.transpose(x, (0, 1, 4, 2, 3))          # (N, Cin, M, T, V)
          .reshape(G, Nb, Cin, M * T * V)
          .transpose(0, 2, 1, 3)
          .reshape(G, Cin, L))

    def const_spec(a):
        nd = a.ndim
        # TODO(synk): at real model sizes single-buffer these constant-index
        # inputs (pipeline_mode=pl.Buffered(1)) to halve their VMEM footprint.
        return pl.BlockSpec(a.shape, lambda n, _nd=nd: (0,) * _nd)

    consts = [q['dbn_s'], q['dbn_t'], q['ablk'], q['masks'], q['pool']]
    for lw in q['layers']:
        consts += [lw['wg'], lw['b1'], lw['wt'], lw['b2']]
    consts += [q['wfcn_t'], q['bfcn']]

    grid_spec = pltpu.PrefetchScalarGridSpec(
        num_scalar_prefetch=0,
        grid=(G,),
        in_specs=[pl.BlockSpec((1, Cin, L), lambda n: (n, 0, 0))]
                 + [const_spec(a) for a in consts],
        out_specs=pl.BlockSpec((1, Nb, num_class), lambda n: (n, 0, 0)),
        scratch_shapes=[pltpu.VMEM((Kt * Cmax, L), jnp.bfloat16)],    # stacked taps
    )

    kernel = functools.partial(_trm_kernel, V=V, Kt=Kt,
                               roll_sign=_pltpu_roll_sign(),
                               inv_pool=1.0 / float(M * T * V))
    out = pl.pallas_call(
        kernel,
        out_shape=jax.ShapeDtypeStruct((G, Nb, num_class), jnp.float32),
        grid_spec=grid_spec,
        compiler_params=pltpu.CompilerParams(
            dimension_semantics=("parallel",)),
    )(x2, *consts)

    return out.reshape(N, num_class)


# ---------------------------------------------------------------------------
# Pure-JAX reference (mirrors the PyTorch forward, eval mode, f32)
# ---------------------------------------------------------------------------
def temporal_regression_reference(x, A_dad, edge_importance, params):
    HI = jax.lax.Precision.HIGHEST
    eps = 1e-5
    N, Cin, T, V, M = x.shape
    Kt = params['layers'][0]['w_tcn'].shape[2]
    pad = (Kt - 1) // 2

    # data_bn on (N*M, V*C, T)
    xb = jnp.transpose(x, (0, 4, 3, 1, 2)).reshape(N * M, V * Cin, T)
    bn = params['data_bn']
    xb = ((xb - bn['mean'][None, :, None]) / jnp.sqrt(bn['var'][None, :, None] + eps)
          * bn['gamma'][None, :, None] + bn['beta'][None, :, None])
    h = jnp.transpose(xb.reshape(N, M, V, Cin, T),
                      (0, 1, 3, 4, 2)).reshape(N * M, Cin, T, V)

    e2 = edge_importance * edge_importance
    A_eff = A_dad * (e2 + jnp.swapaxes(e2, 1, 2))             # (1, V, V)
    K = A_eff.shape[0]

    def bn2d(z, b):
        c = lambda v: v[None, :, None, None]
        return (z - c(b['mean'])) / jnp.sqrt(c(b['var']) + eps) * c(b['gamma']) + c(b['beta'])

    for lp in params['layers']:
        Cout = lp['w_tcn'].shape[0]
        # TemporalGC: 1x1 conv to K*Cout channels then graph einsum
        y = jnp.einsum('oc,nctv->notv', lp['w_gcn'], h, precision=HI) \
            + lp['b_gcn'][None, :, None, None]
        y = y.reshape(N * M, K, Cout, T, V)
        g = jnp.einsum('nkctv,kvw->nctw', y, A_eff, precision=HI)
        # tcn: BN -> ReLU -> (Kt,1) conv -> BN -> dropout(eval identity)
        z = jax.nn.relu(bn2d(g, lp['bn1']))
        zp = jnp.pad(z, ((0, 0), (0, 0), (pad, pad), (0, 0)))
        o = sum(jnp.einsum('oc,nctv->notv', lp['w_tcn'][:, :, d], zp[:, :, d:d + T, :],
                           precision=HI) for d in range(Kt)) \
            + lp['b_tcn'][None, :, None, None]
        o = bn2d(o, lp['bn2'])
        h = jax.nn.relu(o)                                    # residual=False

    pooled = h.mean(axis=(2, 3)).reshape(N, M, -1).mean(axis=1)     # (N, C_last)
    return pooled @ params['fcn_w'].T + params['fcn_b'][None, :]


# ---------------------------------------------------------------------------
if __name__ == "__main__":
    key = jax.random.PRNGKey(0)
    # small shapes consistent with the module: M*T*V = 256 lanes per step, N even
    N, Cin, T, V, M = 2, 4, 8, 16, 2
    num_class = 5
    Kt = 11                                 # temporal_kernel_size hard-coded in the module

    k_x, k_a, k_e, k_p = jax.random.split(key, 4)

    # random symmetric adjacency with self loops, then the module's DAD normalization
    rnd = (jax.random.uniform(k_a, (V, V)) > 0.55).astype(jnp.float32)
    adj = jnp.clip(rnd + rnd.T + jnp.eye(V, dtype=jnp.float32), 0.0, 1.0)
    deg = jnp.sum(adj, axis=0)
    dn = jnp.diag(jnp.where(deg > 0, deg ** -0.5, 0.0))
    A_dad = (dn @ adj @ dn)[None]           # (1, V, V) -> spatial kernel K == 1

    edge_importance = 1.0 + 0.05 * jax.random.normal(k_e, (1, V, V), jnp.float32)

    x = jax.random.normal(k_x, (N, Cin, T, V, M), jnp.float32)
    params = make_model_params(k_p, Cin, V, num_class, Kt)

    out = temporal_regression_forward(x, A_dad, edge_importance, params)
    jax.block_until_ready(out)

    ref = temporal_regression_reference(x, A_dad, edge_importance, params)
    np.testing.assert_allclose(np.asarray(out), np.asarray(ref), atol=5e-2, rtol=5e-2)

    print("KERNEL_OK")
</pallas_src>

<mosaic_0001>
module attributes {stable_mosaic.version = 11 : i64} {
  func.func @probe(%arg0: memref<8x128xf32, #tpu.memory_space<vmem>>, %arg1: memref<8x128xf32, #tpu.memory_space<vmem>>) attributes {dimension_semantics = [], scalar_prefetch = 0 : i64, scratch_operands = 0 : i64, tpu.core_type = #tpu.core_type<tc>} {
    %c0 = arith.constant 0 : index
    %c0_0 = arith.constant 0 : index
    %0 = vector.load %arg0[%c0, %c0_0] : memref<8x128xf32, #tpu.memory_space<vmem>>, vector<8x128xf32>
    %c1_i32 = arith.constant 1 : i32
    %1 = tpu.dynamic_rotate %0 by %c1_i32 dim 1 : vector<8x128xf32>, i32 -> vector<8x128xf32>
    %c0_1 = arith.constant 0 : index
    %c0_2 = arith.constant 0 : index
    %2 = vector.load %arg1[%c0_1, %c0_2] : memref<8x128xf32, #tpu.memory_space<vmem>>, vector<8x128xf32>
    tpu.vector_store %arg1[%c0_1, %c0_2], %1 {strides = array<i32>} : memref<8x128xf32, #tpu.memory_space<vmem>>, vector<8x128xf32>,
    return
  }
}

</mosaic_0001>

<bundles_post_ra>
// kernel: tpu_custom_call.1
= control target key start
LH: loop header
LB: loop body
LE: loop exit
PB: predicated region body
PF: predicated region fallthrough
CT: control target
= control target key end

     0   :  { %6 = vsyncpa [#allocation3], 0  ;;  %s128_s0 = inlined_call_operand.hbm [shape: f32[8,128], index: 0, kind: input, shape index: {}]   ;;  %s129_s1 = inlined_call_operand.hbm [shape: f32[8,128], index: 1, kind: output, shape index: {}]  }
   0x1   :  { %7 = vsyncpa [#allocation4], 0  ;;  %s91_s6 = smov [#allocation2]   ;;  %s43_s10 = scalar_lea.hbm %s128_s0, 128 }
   0x2   :  { %s14_s7 = sshll.u32 %s91_s6, 4  ;;  %p44_p0 = scmp.ne.s32.totalorder %s128_s0, %s43_s10  ;;  %s15_s7 = int_to_ptr.vmem [resolvable:$true] %s14_s7 }
   0x3   :  { %p47_p1 = scmp.lt.u32.totalorder %s43_s10, %s128_s0 }
   0x5   :  { %p49_p2 = pnand %p47_p1, %p44_p0 }
   0x7   :  { %52 = shalt.err (!%p49_p2)
}
   0x8   :  { %s53_s15 = scalar_lea.vmem %s15_s7, 128  ;;  %p58_p4 = scmp.lt.s32.totalorder %s15_s7, %s15_s7 }
   0x9   :  { %p54_p3 = scmp.ne.s32.totalorder %s15_s7, %s53_s15  ;;  %p59_p5 = scmp.lt.s32.totalorder %s53_s15, %s53_s15 }
   0xb   :  { %p60_p6 = por %p59_p5, %p58_p4 }
   0xd   :  { %p61_p7 = pnand %p60_p6, %p54_p3 }
   0xf   :  { %64 = shalt.err (!%p61_p7)
}
  0x10   :  { %17 = dma.hbm_to_vmem [thread:$0]  %s128_s0, 128, %s15_s7, [#allocation3]  }
  0x11   :  { %87 = dma.done.wait [#allocation3], 128  }
  0x12   :  { %88 = vsyncadd [#allocation3], 4294967168  ;;  %v21_v0 = vld [vmem:[#allocation2] sm:$0xff]  ;;  %s92_s18 = smov 1   ;;  %s93_s19 = smov [#allocation5]  }
  0x13   :  { %22 = vrot.lane.b32.xlu0 %v21_v0, %s92_s18  ;;  %s31_s20 = sshll.u32 %s93_s19, 4  ;;  %s32_s20 = int_to_ptr.vmem [resolvable:$true] %s31_s20 }
  0x14   :  { %s65_s21 = scalar_lea.vmem %s32_s20, 128  ;;  %p70_p9 = scmp.lt.s32.totalorder %s32_s20, %s32_s20 }
  0x15   :  { %p66_p8 = scmp.ne.s32.totalorder %s32_s20, %s65_s21  ;;  %p71_p10 = scmp.lt.s32.totalorder %s65_s21, %s65_s21 }
  0x17   :  { %p72_p11 = por %p71_p10, %p70_p9 }
  0x19   :  { %p73_p12 = pnand %p72_p11, %p66_p8 }
  0x85   :  { %v23_v1 = vpop.permute.xlu0 %22 }
  0x86   :  { %24 = vst [vmem:[#allocation5] sm:$0xff] %v23_v1 }
  0x87   :  { %76 = shalt.err (!%p73_p12)
}
  0x88   :  { %s77_s0 = scalar_lea.hbm %s129_s1, 128 }
  0x89   :  { %p78_p13 = scmp.ne.s32.totalorder %s129_s1, %s77_s0  ;;  %p81_p0 = scmp.lt.u32.totalorder %s77_s0, %s129_s1 }
  0x8b   :  { %p83_p1 = pnand %p81_p0, %p78_p13 }
  0x8d   :  { %86 = shalt.err (!%p83_p1)
}
  0x8e   :  { %34 = dma.vmem_to_hbm [thread:$0]  %s32_s20, 128, %s129_s1, [#allocation4]  }
  0x8f   :  { %89 = dma.done.wait [#allocation4], 128  }
  0x90   :  { %90 = vsyncadd [#allocation4], 4294967168 }
  0x91   :  { %38 = vsyncpa [#allocation3], 1 }
  0x92   :  { %39 = vsyncpa [#allocation4], 1 }

</bundles_post_ra>
